<compile_context>
chip_gen: v7x
topology: tpu7x:2x2x1
jax: 0.10.0
libtpu: 0.0.40
codegen_flags: <defaults>
</compile_context>

<pallas_src>
import functools

import jax
import jax.numpy as jnp
from jax import lax
from jax.experimental import pallas as pl
from jax.experimental.pallas import tpu as pltpu


def _gcn_kernel(x_ref, adj_ref, w_ref, b_ref, o_ref, a_bd_ref, *, groups, add_loop):
    """One batch block, all groups, two MXU matmuls.

    x_ref:    [Bb, Cin, N, F]           native layout (no wrapper transpose)
    adj_ref:  [Bb, G,  N, N]
    w_ref:    [Cin*F, F*Cout]  bf16     block weight, resident (constant index map)
    b_ref:    [1, Fg*Cout]     f32      bias tiled over fg, resident
    o_ref:    [G, Bb, N, Fg*Cout] f32   lane-dense (128) output, rows (g, b, n)
    a_bd_ref: [Bb*G*N, Bb*G*N] f32      scratch: block-diagonal adjacency
    """
    Bb, Cin, N, F = x_ref.shape
    G = groups
    D = o_ref.shape[-1]          # Fg * Cout
    BN = Bb * N

    # ---- Stage 0: pack the block-diagonal adjacency (rows/cols ordered (g, b, n)).
    # Zeroed every step (tiny) so a megacore grid split never sees stale scratch.
    a_bd_ref[...] = jnp.zeros_like(a_bd_ref)
    for g in range(G):
        for b in range(Bb):
            r0 = (g * Bb + b) * N
            a_bd_ref[r0:r0 + N, r0:r0 + N] = adj_ref[b, g]

    # Hoisted normalization: ONE rowsum + rsqrt over the whole block (item 1).
    # Off-diagonal blocks are zero, so rowsum(A_bd) == per-(b, g) degree.
    deg = jnp.sum(a_bd_ref[...], axis=-1, keepdims=True)          # [G*Bb*N, 1]
    if add_loop:
        deg = deg + 1.0                                            # self-loop folded
    d = lax.rsqrt(jnp.maximum(deg, 1.0))                           # clamp(min=1), f32

    # ---- Stage 1: grouped 1x1 conv == ONE matmul against the block weight.
    # Assemble [Bb*N, Cin*F] (rows (b,n), cols (ci,f)) using only leading-dim
    # slices + leading-dim-merge reshapes and a single lane concat, once per step.
    x4 = x_ref[...]                                                # [Bb, Cin, N, F]
    xt = jnp.concatenate(
        [x4[:, c].reshape(BN, F) for c in range(Cin)], axis=1)     # [Bb*N, Cin*F]
    h = jnp.dot(xt.astype(jnp.bfloat16), w_ref[...],
                preferred_element_type=jnp.float32)                # [Bb*N, F*Cout]

    # Re-stack per-group column blocks (128-lane-aligned slices) into rows (g, b, n)
    # and fold the left D^-1/2 of the symmetric norm: hd = d * h (f32).
    hd = jnp.concatenate(
        [h[:, g * D:(g + 1) * D] * d[g * BN:(g + 1) * BN] for g in range(G)],
        axis=0)                                                    # [G*Bb*N, D]

    # ---- Stage 2: all Bb*G aggregations as ONE MXU matmul (block-diagonal A).
    agg = jnp.dot(a_bd_ref[...].astype(jnp.bfloat16), hd.astype(jnp.bfloat16),
                  preferred_element_type=jnp.float32)              # [G*Bb*N, D]
    if add_loop:
        agg = agg + hd                                             # I @ (d*h) term
    out = agg * d + b_ref[...]                                     # right D^-1/2 + bias

    o_ref[...] = out.reshape(G, Bb, N, D).astype(o_ref.dtype)


def dense_gcn_conv2d(x, adj, weight, bias, *, groups, add_loop=True, block_b=4):
    """x: [B, Cin, N, F], adj: [B, G, N, N], weight: [G, Cin, Cout], bias: [Cout]."""
    B, Cin, N, F = x.shape
    G = groups
    assert F % G == 0, "F must be divisible by groups"
    Fg = F // G
    Cout = weight.shape[-1]
    D = Fg * Cout

    # grid_b >= 2 whenever possible so v7x megacore has work for both TensorCores
    # and the pipeline double-buffers (item 5).  Larger block_b packs more (b, g)
    # blocks into one MXU pass (Bb*G*N = 128 on v5e -> block_b = 4 at G=2, N=16).
    Bb = min(block_b, max(1, B // 2))
    grid_b = pl.cdiv(B, Bb)
    GBN = G * Bb * N

    # glue (built once in XLA, outside the kernel):
    #  * block weight folding the grouped 1x1 conv:
    #      W_big[ci*F + f, f2*Cout + co] = weight[f // Fg, ci, co] * delta(f, f2)
    #    bf16 so the resident copy (and its single DMA) is half-size.
    w_per_f = weight[jnp.arange(F) // Fg]                          # [F, Cin, Cout]
    eye_f = jnp.eye(F, dtype=weight.dtype)
    w_big = jnp.einsum('fio,fk->ifko', w_per_f, eye_f)             # [Cin, F, F, Cout]
    w_big = w_big.reshape(Cin * F, F * Cout).astype(jnp.bfloat16)
    #  * bias tiled over fg so it broadcasts over the [*, Fg*Cout] output tile
    b_tiled = jnp.tile(bias, Fg).reshape(1, D).astype(jnp.float32)

    # VMEM per step (lane-padded, double-buffered): x ~ 2*Bb*Cin*N*128*4, adj ~
    # 2*Bb*G*N*128*4, out ~ 2*G*Bb*N*D*4, resident W_big 64 KiB + bias, plus the
    # (G*Bb*N)^2*4 block-diag scratch -- a few hundred KiB at these shapes, far
    # below the 32 MiB scoped default on every generation (v7x 64 MiB physical).
    # For large N/B cap block_b so (G*Bb*N)^2*4 stays small (scratch is the
    # fastest-growing term).                                            (item 6)
    out_k = pl.pallas_call(
        functools.partial(_gcn_kernel, groups=G, add_loop=add_loop),
        out_shape=jax.ShapeDtypeStruct((G, B, N, D), jnp.float32),
        grid=(grid_b,),
        in_specs=[
            # native layouts, no wrapper-side transpose (no extra HBM pass)
            pl.BlockSpec((Bb, Cin, N, F), lambda i: (i, 0, 0, 0)),
            pl.BlockSpec((Bb, G, N, N), lambda i: (i, 0, 0, 0)),
            # constant index maps: block weight / bias DMA'd once, kept resident
            pl.BlockSpec((Cin * F, F * Cout), lambda i: (0, 0)),
            pl.BlockSpec((1, D), lambda i: (0, 0)),
        ],
        out_specs=pl.BlockSpec((G, Bb, N, D), lambda i: (0, i, 0, 0)),
        scratch_shapes=[pltpu.VMEM((GBN, GBN), jnp.float32)],
        compiler_params=pltpu.CompilerParams(
            dimension_semantics=("parallel",)),
    )(x, adj, w_big, b_tiled)

    # glue: [G, B, N, Fg*Cout] -> [B, Cout, N, F] (f = g*Fg + fg); one XLA transpose.
    # TODO(synk): emit [B, Cout, N*F] directly from the kernel (in-kernel transpose,
    # review item 9) to drop this extra HBM pass at large shapes.
    out = out_k.reshape(G, B, N, Fg, Cout).transpose(1, 4, 2, 0, 3).reshape(B, Cout, N, F)
    return out


def _reference(x, adj, weight, bias, *, groups, add_loop=True):
    """Pure-JAX (f32) reference mirroring the PyTorch forward."""
    B, Cin, N, F = x.shape
    G = groups
    Fg = F // G
    a = adj
    if add_loop:
        a = a + jnp.eye(N, dtype=a.dtype)
    d = jnp.maximum(jnp.sum(a, axis=-1), 1.0) ** -0.5
    an = d[..., :, None] * a * d[..., None, :]                      # [B, G, N, N]
    xg = x.reshape(B, Cin, N, G, Fg)                                # [B, Cin, N, G, Fg]
    h = jnp.einsum('bcngf,gco->bognf', xg, weight)                  # [B, Cout, G, N, Fg]
    out = jnp.einsum('bgnm,bogmf->bognf', an, h)                    # [B, Cout, G, N, Fg]
    out = out + bias[None, :, None, None, None]
    return out.transpose(0, 1, 3, 2, 4).reshape(B, weight.shape[-1], N, F)


if __name__ == "__main__":
    B, Cin, Cout, G, N, F = 2, 4, 8, 2, 16, 32

    key = jax.random.PRNGKey(0)
    kx, kadj, kw, kb = jax.random.split(key, 4)

    x = jax.random.normal(kx, (B, Cin, N, F), dtype=jnp.float32)
    adj = jax.random.uniform(kadj, (B, G, N, N), dtype=jnp.float32)   # non-negative adjacency
    weight = jax.random.normal(kw, (G, Cin, Cout), dtype=jnp.float32) * (1.0 / jnp.sqrt(Cin))
    bias = jax.random.normal(kb, (Cout,), dtype=jnp.float32) * 0.1
    # (the PyTorch module's reset_parameters() zeros the bias; nonzero here to
    #  exercise the bias-add path.)

    out = dense_gcn_conv2d(x, adj, weight, bias, groups=G, add_loop=True)
    out = jax.block_until_ready(out)

    ref = _reference(x, adj, weight, bias, groups=G, add_loop=True)
    assert out.shape == (B, Cout, N, F), out.shape
    # bf16 MXU inputs with f32 accumulation -> ~1e-2 relative tolerance
    max_err = float(jnp.max(jnp.abs(out - ref)))
    assert jnp.allclose(out, ref, atol=2e-2, rtol=2e-2), max_err

    print("KERNEL_OK")
</pallas_src>

<mosaic_0001>
module attributes {stable_mosaic.version = 11 : i64} {
  func.func @_gcn_kernel(%arg0: i32, %arg1: memref<1x4x16x32xf32, #tpu.memory_space<vmem>>, %arg2: memref<1x2x16x16xf32, #tpu.memory_space<vmem>>, %arg3: memref<128x256xbf16, #tpu.memory_space<vmem>>, %arg4: memref<1x128xf32, #tpu.memory_space<vmem>>, %arg5: memref<2x1x16x128xf32, #tpu.memory_space<vmem>>, %arg6: memref<32x32xf32, #tpu.memory_space<vmem>>) attributes {dimension_semantics = [#tpu.dimension_semantics<parallel>], iteration_bounds = array<i64: 2>, scalar_prefetch = 0 : i64, scratch_operands = 1 : i64, tpu.core_type = #tpu.core_type<tc>, window_params = [{transform_indices = @transform_0, window_bounds = array<i64: 1, 4, 16, 32>}, {transform_indices = @transform_1, window_bounds = array<i64: 1, 2, 16, 16>}, {pipeline_mode = #tpu.pipeline_mode<synchronous>, transform_indices = @transform_2, window_bounds = array<i64: 128, 256>}, {pipeline_mode = #tpu.pipeline_mode<synchronous>, transform_indices = @transform_3, window_bounds = array<i64: 1, 128>}, {transform_indices = @transform_4, window_bounds = array<i64: 2, 1, 16, 128>}]} {
    %cst = arith.constant 0.000000e+00 : f32
    %0 = vector.broadcast %cst : f32 to vector<32x32xf32>
    %c0 = arith.constant 0 : index
    %c0_0 = arith.constant 0 : index
    %1 = vector.load %arg6[%c0, %c0_0] : memref<32x32xf32, #tpu.memory_space<vmem>>, vector<32x32xf32>
    tpu.vector_store %arg6[%c0, %c0_0], %0 {strides = array<i32>} : memref<32x32xf32, #tpu.memory_space<vmem>>, vector<32x32xf32>,
    %c0_1 = arith.constant 0 : index
    %c0_2 = arith.constant 0 : index
    %c0_3 = arith.constant 0 : index
    %c0_4 = arith.constant 0 : index
    %2 = vector.load %arg2[%c0_1, %c0_2, %c0_3, %c0_4] : memref<1x2x16x16xf32, #tpu.memory_space<vmem>>, vector<1x1x16x16xf32>
    %3 = vector.shape_cast %2 : vector<1x1x16x16xf32> to vector<16x16xf32>
    %c0_5 = arith.constant 0 : index
    %c0_6 = arith.constant 0 : index
    %4 = vector.load %arg6[%c0_5, %c0_6] : memref<32x32xf32, #tpu.memory_space<vmem>>, vector<16x16xf32>
    tpu.vector_store %arg6[%c0_5, %c0_6], %3 {strides = array<i32>} : memref<32x32xf32, #tpu.memory_space<vmem>>, vector<16x16xf32>,
    %c0_7 = arith.constant 0 : index
    %c1 = arith.constant 1 : index
    %c0_8 = arith.constant 0 : index
    %c0_9 = arith.constant 0 : index
    %5 = vector.load %arg2[%c0_7, %c1, %c0_8, %c0_9] : memref<1x2x16x16xf32, #tpu.memory_space<vmem>>, vector<1x1x16x16xf32>
    %6 = vector.shape_cast %5 : vector<1x1x16x16xf32> to vector<16x16xf32>
    %c16 = arith.constant 16 : index
    %c16_10 = arith.constant 16 : index
    %7 = vector.load %arg6[%c16, %c16_10] : memref<32x32xf32, #tpu.memory_space<vmem>>, vector<16x16xf32>
    tpu.vector_store %arg6[%c16, %c16_10], %6 {strides = array<i32>} : memref<32x32xf32, #tpu.memory_space<vmem>>, vector<16x16xf32>,
    %c0_11 = arith.constant 0 : index
    %c0_12 = arith.constant 0 : index
    %8 = vector.load %arg6[%c0_11, %c0_12] : memref<32x32xf32, #tpu.memory_space<vmem>>, vector<32x32xf32>
    %cst_13 = arith.constant dense<0.000000e+00> : vector<32xf32>
    %9 = vector.multi_reduction <add>, %8, %cst_13 [1] : vector<32x32xf32> to vector<32xf32>
    %10 = vector.shape_cast %9 : vector<32xf32> to vector<32x1xf32>
    %cst_14 = arith.constant 1.000000e+00 : f32
    %11 = vector.broadcast %cst_14 : f32 to vector<32x1xf32>
    %12 = arith.addf %10, %11 : vector<32x1xf32>
    %cst_15 = arith.constant 1.000000e+00 : f32
    %13 = vector.broadcast %cst_15 : f32 to vector<32x1xf32>
    %14 = arith.maximumf %12, %13 : vector<32x1xf32>
    %15 = math.rsqrt %14 : vector<32x1xf32>
    %c0_16 = arith.constant 0 : index
    %c0_17 = arith.constant 0 : index
    %c0_18 = arith.constant 0 : index
    %c0_19 = arith.constant 0 : index
    %16 = vector.load %arg1[%c0_16, %c0_17, %c0_18, %c0_19] : memref<1x4x16x32xf32, #tpu.memory_space<vmem>>, vector<1x4x16x32xf32>
    %17 = vector.extract_strided_slice %16 {offsets = [0, 0, 0, 0], sizes = [1, 1, 16, 32], strides = [1, 1, 1, 1]} : vector<1x4x16x32xf32> to vector<1x1x16x32xf32>
    %18 = vector.shape_cast %17 : vector<1x1x16x32xf32> to vector<1x16x32xf32>
    %19 = vector.shape_cast %18 : vector<1x16x32xf32> to vector<16x32xf32>
    %20 = vector.extract_strided_slice %16 {offsets = [0, 1, 0, 0], sizes = [1, 1, 16, 32], strides = [1, 1, 1, 1]} : vector<1x4x16x32xf32> to vector<1x1x16x32xf32>
    %21 = vector.shape_cast %20 : vector<1x1x16x32xf32> to vector<1x16x32xf32>
    %22 = vector.shape_cast %21 : vector<1x16x32xf32> to vector<16x32xf32>
    %23 = vector.extract_strided_slice %16 {offsets = [0, 2, 0, 0], sizes = [1, 1, 16, 32], strides = [1, 1, 1, 1]} : vector<1x4x16x32xf32> to vector<1x1x16x32xf32>
    %24 = vector.shape_cast %23 : vector<1x1x16x32xf32> to vector<1x16x32xf32>
    %25 = vector.shape_cast %24 : vector<1x16x32xf32> to vector<16x32xf32>
    %26 = vector.extract_strided_slice %16 {offsets = [0, 3, 0, 0], sizes = [1, 1, 16, 32], strides = [1, 1, 1, 1]} : vector<1x4x16x32xf32> to vector<1x1x16x32xf32>
    %27 = vector.shape_cast %26 : vector<1x1x16x32xf32> to vector<1x16x32xf32>
    %28 = vector.shape_cast %27 : vector<1x16x32xf32> to vector<16x32xf32>
    %29 = tpu.concatenate %19, %22, %25, %28 in 1 : vector<16x32xf32>, vector<16x32xf32>, vector<16x32xf32>, vector<16x32xf32> -> vector<16x128xf32>
    %30 = arith.truncf %29 : vector<16x128xf32> to vector<16x128xbf16>
    %c0_20 = arith.constant 0 : index
    %c0_21 = arith.constant 0 : index
    %31 = vector.load %arg3[%c0_20, %c0_21] : memref<128x256xbf16, #tpu.memory_space<vmem>>, vector<128x256xbf16>
    %cst_22 = arith.constant dense<0.000000e+00> : vector<16x256xf32>
    %32 = tpu.matmul %30, %31, %cst_22 {dimension_numbers = #tpu.dot_dimension_numbers<[1], [0], [0], [1], [0, 0, 1, 1], [], []>} : vector<16x128xbf16>, vector<128x256xbf16>, vector<16x256xf32> -> vector<16x256xf32>
    %33 = vector.extract_strided_slice %32 {offsets = [0, 0], sizes = [16, 128], strides = [1, 1]} : vector<16x256xf32> to vector<16x128xf32>
    %34 = vector.extract_strided_slice %15 {offsets = [0, 0], sizes = [16, 1], strides = [1, 1]} : vector<32x1xf32> to vector<16x1xf32>
    %35 = vector.broadcast %34 : vector<16x1xf32> to vector<16x128xf32>
    %36 = arith.mulf %33, %35 : vector<16x128xf32>
    %37 = vector.extract_strided_slice %32 {offsets = [0, 128], sizes = [16, 128], strides = [1, 1]} : vector<16x256xf32> to vector<16x128xf32>
    %38 = vector.extract_strided_slice %15 {offsets = [16, 0], sizes = [16, 1], strides = [1, 1]} : vector<32x1xf32> to vector<16x1xf32>
    %39 = vector.broadcast %38 : vector<16x1xf32> to vector<16x128xf32>
    %40 = arith.mulf %37, %39 : vector<16x128xf32>
    %41 = tpu.concatenate %36, %40 in 0 : vector<16x128xf32>, vector<16x128xf32> -> vector<32x128xf32>
    %c0_23 = arith.constant 0 : index
    %c0_24 = arith.constant 0 : index
    %42 = vector.load %arg6[%c0_23, %c0_24] : memref<32x32xf32, #tpu.memory_space<vmem>>, vector<32x32xf32>
    %43 = arith.truncf %42 : vector<32x32xf32> to vector<32x32xbf16>
    %44 = arith.truncf %41 : vector<32x128xf32> to vector<32x128xbf16>
    %cst_25 = arith.constant dense<0.000000e+00> : vector<32x128xf32>
    %45 = tpu.matmul %43, %44, %cst_25 {dimension_numbers = #tpu.dot_dimension_numbers<[1], [0], [0], [1], [0, 0, 1, 1], [], []>} : vector<32x32xbf16>, vector<32x128xbf16>, vector<32x128xf32> -> vector<32x128xf32>
    %46 = arith.addf %45, %41 : vector<32x128xf32>
    %47 = vector.broadcast %15 : vector<32x1xf32> to vector<32x128xf32>
    %48 = arith.mulf %46, %47 : vector<32x128xf32>
    %c0_26 = arith.constant 0 : index
    %c0_27 = arith.constant 0 : index
    %49 = vector.load %arg4[%c0_26, %c0_27] : memref<1x128xf32, #tpu.memory_space<vmem>>, vector<1x128xf32>
    %50 = vector.broadcast %49 : vector<1x128xf32> to vector<32x128xf32>
    %51 = arith.addf %48, %50 : vector<32x128xf32>
    %52 = vector.shape_cast %51 : vector<32x128xf32> to vector<2x1x16x128xf32>
    %c0_28 = arith.constant 0 : index
    %c0_29 = arith.constant 0 : index
    %c0_30 = arith.constant 0 : index
    %c0_31 = arith.constant 0 : index
    %53 = vector.load %arg5[%c0_28, %c0_29, %c0_30, %c0_31] : memref<2x1x16x128xf32, #tpu.memory_space<vmem>>, vector<2x1x16x128xf32>
    tpu.vector_store %arg5[%c0_28, %c0_29, %c0_30, %c0_31], %52 {strides = array<i32>} : memref<2x1x16x128xf32, #tpu.memory_space<vmem>>, vector<2x1x16x128xf32>,
    return
  }
  func.func @transform_0(%arg0: i32) -> (i32, i32, i32, i32) {
    %c0_i32 = arith.constant 0 : i32
    %c0_i32_0 = arith.constant 0 : i32
    %c0_i32_1 = arith.constant 0 : i32
    %c0_i32_2 = arith.constant 0 : i32
    return %arg0, %c0_i32, %c0_i32_0, %c0_i32_1 : i32, i32, i32, i32
  }
  func.func @transform_1(%arg0: i32) -> (i32, i32, i32, i32) {
    %c0_i32 = arith.constant 0 : i32
    %c0_i32_0 = arith.constant 0 : i32
    %c0_i32_1 = arith.constant 0 : i32
    %c0_i32_2 = arith.constant 0 : i32
    return %arg0, %c0_i32, %c0_i32_0, %c0_i32_1 : i32, i32, i32, i32
  }
  func.func @transform_2(%arg0: i32) -> (i32, i32) {
    %c0_i32 = arith.constant 0 : i32
    %c0_i32_0 = arith.constant 0 : i32
    %c0_i32_1 = arith.constant 0 : i32
    return %c0_i32, %c0_i32_0 : i32, i32
  }
  func.func @transform_3(%arg0: i32) -> (i32, i32) {
    %c0_i32 = arith.constant 0 : i32
    %c0_i32_0 = arith.constant 0 : i32
    %c0_i32_1 = arith.constant 0 : i32
    return %c0_i32, %c0_i32_0 : i32, i32
  }
  func.func @transform_4(%arg0: i32) -> (i32, i32, i32, i32) {
    %c0_i32 = arith.constant 0 : i32
    %c0_i32_0 = arith.constant 0 : i32
    %c0_i32_1 = arith.constant 0 : i32
    %c0_i32_2 = arith.constant 0 : i32
    return %c0_i32, %arg0, %c0_i32_0, %c0_i32_1 : i32, i32, i32, i32
  }
}

</mosaic_0001>

<bundles_post_ra>
// kernel: tpu_custom_call.1
= control target key start
LH: loop header
LB: loop body
LE: loop exit
PB: predicated region body
PF: predicated region fallthrough
CT: control target
= control target key end

     0   :  { %s1379_s0 = inlined_call_operand.hbm [shape: f32[2,4,16,32], index: 0, kind: input, shape index: {}]   ;;  %s1380_s1 = inlined_call_operand.hbm [shape: f32[2,2,16,16], index: 1, kind: input, shape index: {}]   ;;  %s1381_s2 = inlined_call_operand.hbm [shape: bf16[128,256], index: 2, kind: input, shape index: {}]   ;;  %s1382_s3 = inlined_call_operand.vmem [shape: f32[1,128], index: 3, kind: input, shape index: {}]   ;;  %s1383_s4 = inlined_call_operand.hbm [shape: f32[2,2,16,128], index: 4, kind: output, shape index: {}]  }
   0x1   :  { %1387 = sst [smem:[#allocation16_spill]] %s1379_s0 }
   0x2   :  { %1388 = sst [smem:[#allocation17_spill]] %s1381_s2 }
   0x3   :  { %9 = vsyncpa [#allocation4], 0 }
   0x4   :  { %11 = vsyncpa [#allocation4 + $0x1], 0 }
   0x5   :  { %12 = vsyncpa [#allocation7], 0 }
   0x6   :  { %14 = vsyncpa [#allocation7 + $0x1], 0 }
   0x7   :  { %15 = vsyncpa [#allocation5], 0 }
   0x8   :  { %17 = vsyncpa [#allocation5 + $0x1], 0  ;;  %s1098_s15 = smov 0   ;;  %s1100_s16 = smov 0  }
   0x9   :  { %s1102_s17 = smov 0   ;;  %s1104_s18 = smov 0  }
   0xa LB: > { %s1119_s19 = sadd.s32 4294967295, %s1053_s18   ;;  %s733_s20 = sadd.s32 4294967294, %s1053_s18   ;;  %s1053_s18 = sphi %s1104_s18, %s1407_s18   ;;  %s1049_s17 = sphi %s1102_s17, %s1406_s17   ;;  %s1045_s16 = sphi %s1100_s16, %s1405_s16   ;;  %s1041_s15 = sphi %s1098_s15, %s1404_s15  }
   0xb   : > { %p43_p0 = scmp.ne.s32.totalorder %s1045_s16, %s1041_s15  ;;  %p1384_p1 = scmp.eq.s32.totalorder %s1119_s19, 0 }
   0xc   : > { %p141_p3 = scmp.eq.s32.totalorder %s733_s20, 1  ;;  %p734_p5 = scmp.ge.s32.totalorder %s1053_s18, 1 }
   0xd   : > { %p1128_p4 = por %p1384_p1, %p43_p0  ;;  %p148_p7 = scmp.lt.s32.totalorder %s1053_s18, 3 }
   0xe   : > { %p1133_p6 = por %p141_p3, %p43_p0  ;;  %s1055_s24 = smov [#allocation8]  }
   0xf   : > { %s1389_s21 = scalar_select %p1128_p4, 1, 0 }
  0x10   : > { %s1390_s22 = scalar_select %p1133_p6, 1, 0 }
  0x11   : > { %p1138_p8 = pnand %p734_p5, %p148_p7  ;;  %s160_s25 = sshll.u32 %s1055_s24, 4  ;;  %s1142_s25 = int_to_ptr.vmem [resolvable:$true] %s160_s25 }
  0x12   : > { %s1154_s27 = sadd.s32 1, %s1053_s18   ;;  %s30_s28 = sadd.s32 1, %s1049_s17 }
  0x13   : > { %s1391_s23 = scalar_select %p1138_p8, 1, 0 }
  0x14   : > { %p805_p9 = pneg %p1138_p8  ;;  %s27_s29 = ssub.s32 %s1053_s18, %s1154_s27 }
  0x15   : > { %s1393_s2 = sld [smem:[#allocation17_spill]] }
  0x16   : > { %p1149_p11 = pnand %p805_p9, %p1384_p1 }
  0x18   : > { %p921_p13 = pneg %p1149_p11 }
  0x1b   : > { %s919_s6 = scalar_lea.hbm %s1393_s2, 2048 }
  0x1c   : > { %p920_p12 = scmp.ne.s32.totalorder %s1393_s2, %s919_s6  ;;  %p926_p5 = scmp.lt.u32.totalorder %s919_s6, %s1393_s2 }
  0x1e   : > { %p922_p0 = pnand %p921_p13, %p920_p12 }
  0x20   : > { %p923_p3 = pneg %p922_p0 }
  0x22   : > { %p928_p7 = pnand %p926_p5, %p923_p3 }
  0x24   : > { %931 = shalt.err (!%p928_p7)
}
  0x25   : > { %s932_s11 = scalar_lea.vmem %s1142_s25, 2048  ;;  %p940_p2 = scmp.lt.s32.totalorder %s1142_s25, %s1142_s25 }
  0x26   : > { %p933_p9 = scmp.ne.s32.totalorder %s1142_s25, %s932_s11  ;;  %p941_p6 = scmp.lt.s32.totalorder %s932_s11, %s932_s11 }
  0x28   : > { %p935_p10 = pnand %p933_p9, %p921_p13  ;;  %p942_p4 = por %p941_p6, %p940_p2 }
  0x2a   : > { %p936_p1 = pneg %p935_p10 }
  0x2c   : > { %p943_p8 = pnand %p942_p4, %p936_p1 }
  0x2e   : > { %946 = shalt.err (!%p943_p8)
}
  0x2f   : > { %s1056_s12 = smov 128   ;;  %s1057_s13 = smov 8  }
  0x30   : > { %808 = dma.hbm_to_vmem [thread:$0]  (!%p1149_p11), %s1393_s2, 2048, %s1142_s25, [#allocation7], %s1056_s12, %s1056_s12, %s1057_s13  }
  0x31   : > { %p28_p1 = scmp.eq.s32.totalorder %s27_s29, 0  ;;  %p37_p2 = scmp.ne.s32.totalorder %s1049_s17, %s1045_s16 }
  0x32   : > { %p38_p4 = scmp.eq.s32.totalorder %s1053_s18, 0  ;;  %p821_p6 = scmp.lt.s32.totalorder %s1053_s18, 2 }
  0x33   : > { %s1188_s24 = scalar_select %p28_p1, %s1049_s17, %s30_s28  }
  0x34   : > { %p39_p8 = por %p38_p4, %p37_p2  ;;  %p1394_p10 = scmp.eq.s32.totalorder %s1119_s19, 1 }
  0x35   : > { %s1197_s26 = sand.u32 1, %s1049_s17   ;;  %s774_s5 = sshll.u32 %s1053_s18, 10 }
  0x36   : > { %p1192_p12 = por %p1394_p10, %p37_p2  ;;  %s737_s6 = sshll.u32 %s1197_s26, 6 }
  0x37   : > { %s1396_s0 = sld [smem:[#allocation16_spill]]  ;;  %s181_s28 = scalar_lea.vmem [#allocation3], %s737_s6 }
  0x38   : > { %s188_s8 = sshll.u32 %s181_s28, 4  ;;  %p1206_p11 = pnand %p821_p6, %p39_p8  ;;  %s1210_s8 = int_to_ptr.vmem [resolvable:$true] %s188_s8 }
  0x39   : > { %s198_s10 = sand.u32 1, %s1053_s18   ;;  %s178_s11 = scalar_lea.sflag [#allocation4], %s1197_s26 }
  0x3a   : > { %p949_p0 = pneg %p1206_p11 }
  0x3d   : > { %s1204_s29 = scalar_lea.hbm %s1396_s0, %s774_s5  ;;  %s952_s6 = scalar_lea.hbm %s1396_s0, 2048 }
  0x3e   : > { %s947_s14 = scalar_lea.hbm %s1204_s29, 1024  ;;  %p953_p7 = scmp.lt.u32.totalorder %s1204_s29, %s1396_s0 }
  0x3f   : > { %p948_p13 = scmp.ne.s32.totalorder %s1204_s29, %s947_s14  ;;  %p954_p9 = scmp.lt.u32.totalorder %s952_s6, %s947_s14 }
  0x40   : > { %p956_p2 = scmp.lt.u32.totalorder %s947_s14, %s1204_s29 }
  0x41   : > { %p950_p3 = pnand %p949_p0, %p948_p13  ;;  %p955_p1 = por %p954_p9, %p953_p7 }
  0x43   : > { %p951_p5 = pneg %p950_p3  ;;  %p957_p4 = por %p956_p2, %p955_p1 }
  0x45   : > { %p958_p6 = pnand %p957_p4, %p951_p5 }
  0x47   : > { %961 = shalt.err (!%p958_p6)
}
  0x48   : > { %s962_s28 = scalar_lea.vmem %s1210_s8, 1024  ;;  %s1058_s20 = smov [#allocation3]  }
  0x49   : > { %p963_p8 = scmp.ne.s32.totalorder %s1210_s8, %s962_s28  ;;  %s967_s5 = sshll.u32 %s1058_s20, 4  ;;  %s968_s5 = int_to_ptr.vmem [resolvable:$false] %s967_s5 }
  0x4a   : > { %s969_s25 = scalar_lea.vmem %s968_s5, 2048  ;;  %p970_p3 = scmp.lt.s32.totalorder %s1210_s8, %s968_s5 }
  0x4b   : > { %p965_p10 = pnand %p963_p8, %p949_p0  ;;  %p971_p7 = scmp.lt.s32.totalorder %s969_s25, %s962_s28 }
  0x4d   : > { %p966_p13 = pneg %p965_p10  ;;  %p972_p9 = por %p971_p7, %p970_p3 }
  0x4f   : > { %p973_p1 = pnand %p972_p9, %p966_p13 }
  0x51   : > { %976 = shalt.err (!%p973_p1)
}
  0x52   : > { %812 = dma.hbm_to_vmem [thread:$0]  (!%p1206_p11), %s1204_s29, 1024, %s1210_s8, %s178_s11, %s1056_s12, %s1056_s12, %s1057_s13  }
  0x53   : > { %s740_s14 = sshll.u32 %s1197_s26, 5  ;;  %s775_s6 = sshll.u32 %s1053_s18, 9 }
  0x54   : > { %s1249_s20 = scalar_lea.hbm %s1380_s1, %s775_s6  ;;  %s202_s5 = scalar_lea.vmem [#allocation6], %s740_s14 }
  0x55   : > { %s209_s25 = sshll.u32 %s202_s5, 4  ;;  %s1255_s0 = scalar_lea.sflag [#allocation7], %s198_s10  ;;  %s1251_s25 = int_to_ptr.vmem [resolvable:$true] %s209_s25 }
  0x56   : > { %s977_s2 = scalar_lea.hbm %s1249_s20, 512  ;;  %s982_s8 = scalar_lea.hbm %s1380_s1, 1024 }
  0x57   : > { %p978_p5 = scmp.ne.s32.totalorder %s1249_s20, %s977_s2  ;;  %p983_p6 = scmp.lt.u32.totalorder %s1249_s20, %s1380_s1 }
  0x58   : > { %p984_p8 = scmp.lt.u32.totalorder %s982_s8, %s977_s2  ;;  %p986_p13 = scmp.lt.u32.totalorder %s977_s2, %s1249_s20 }
  0x59   : > { %p980_p2 = pnand %p978_p5, %p949_p0 }
  0x5a   : > { %p985_p10 = por %p984_p8, %p983_p6 }
  0x5b   : > { %p981_p4 = pneg %p980_p2 }
  0x5c   : > { %p987_p3 = por %p986_p13, %p985_p10 }
  0x5e   : > { %p988_p7 = pnand %p987_p3, %p981_p4 }
  0x60   : > { %991 = shalt.err (!%p988_p7)
}
  0x61   : > { %s992_s10 = scalar_lea.vmem %s1251_s25, 512  ;;  %s1059_s14 = smov [#allocation6]  }
  0x62   : > { %p993_p9 = scmp.ne.s32.totalorder %s1251_s25, %s992_s10  ;;  %s997_s7 = sshll.u32 %s1059_s14, 4  ;;  %s998_s7 = int_to_ptr.vmem [resolvable:$false] %s997_s7 }
  0x63   : > { %s999_s28 = scalar_lea.vmem %s998_s7, 1024  ;;  %p1000_p2 = scmp.lt.s32.totalorder %s1251_s25, %s998_s7 }
  0x64   : > { %p995_p1 = pnand %p993_p9, %p949_p0  ;;  %p1001_p6 = scmp.lt.s32.totalorder %s999_s28, %s992_s10 }
  0x66   : > { %p996_p5 = pneg %p995_p1  ;;  %p1002_p8 = por %p1001_p6, %p1000_p2 }
  0x68   : > { %p1003_p10 = pnand %p1002_p8, %p996_p5 }
  0x6a   : > { %1006 = shalt.err (!%p1003_p10)
}
  0x6b   : > { %815 = dma.hbm_to_vmem [thread:$0]  (!%p1206_p11), %s1249_s20, 512, %s1251_s25, %s1255_s0, %s1056_s12, %s1056_s12, %s1057_s13  }
  0x6c   : > { %p1398_p0 = scmp.ne.s32.totalorder %s1391_s23, 0 }
  0x6d   : > { %s1287_s2 = sand.u32 (!%p1398_p0), 1, %s1045_s16   ;;  %p1399_p4 = scmp.ne.s32.totalorder (!%p1398_p0), %s1389_s21, 0 }
  0x6e   : > { %221 = sbr.rel (%p1398_p0) target bundleno = 709 (0x2c5), region = 36  ;;  %s744_s5 = sshll.u32 (!%p1398_p0), %s1287_s2, 6 }
  0x6f   : > { %s224_s26 = scalar_lea.sflag (!%p1398_p0), [#allocation4], %s1287_s2  ;;  %s1291_s29 = scalar_lea.vmem (!%p1398_p0), [#allocation3], %s744_s5 }
  0x75   : > { %1024 = dma.done.wait (%p1399_p4), %s224_s26, 1024  }
  0x76   : > { %1026 = vsyncadd (%p1399_p4), %s224_s26, 4294966272  ;;  %s232_s0 = sand.u32 1, %s1119_s19   ;;  %s745_s23 = sshll.u32 %s1287_s2, 5 }
  0x77   : > { %s233_s12 = scalar_lea.sflag [#allocation7], %s232_s0  ;;  %s1301_s13 = scalar_lea.vmem [#allocation6], %s745_s23 }
  0x78   : > { %1028 = dma.done.wait (%p1399_p4), %s233_s12, 512  }
  0x79   : > { %1030 = vsyncadd (%p1399_p4), %s233_s12, 4294966784  ;;  %p1400_p11 = scmp.eq.s32.totalorder %s1119_s19, 0 }
  0x7b   : > { %1032 = dma.done.wait (%p1400_p11), [#allocation7], 2048   ;;  %p1401_p13 = pmov %p1400_p11 }
  0x7c   : > { %v1060_v0 = vmov 0   ;;  %v325_v1 = vld [vmem:[%s1291_s29 + $0x10] sm:$0xff]  ;;  %v326_v2 = vld [vmem:[%s1291_s29 + $0x18] sm:$0xff]  ;;  %v327_v3 = vld [vmem:[%s1291_s29 + $0x20] sm:$0xff]  ;;  %vm271_vm0 = vcmask 261120   ;;  %v1061_v8 = vmov 0.0  }
  0x7d   : > { %1034 = vsyncadd (%p1401_p13), [#allocation7], 4294965248  ;;  %492 = vmatprep.mubr.bf16.mxu0 %v1060_v0  ;;  %v872_v4 = vpack.i.bf16 %v326_v2, %v325_v1  ;;  %v328_v5 = vld [vmem:[%s1291_s29 + $0x28] sm:$0xff]  ;;  %v329_v6 = vld [vmem:[%s1291_s29 + $0x30] sm:$0xff]  ;;  %272 = vst.msk [vmem:[#allocation2] sm:$0xff] %vm271_vm0, %v1061_v8  ;;  %s1062_s21 = smov 32  }
  0x7e   : > { %v330_v7 = vld [vmem:[%s1291_s29 + $0x38] sm:$0xff]  ;;  %273 = vst.msk [vmem:[#allocation2 + $0x8] sm:$0xff] %vm271_vm0, %v1061_v8  ;;  %274 = vst.msk [vmem:[#allocation2 + $0x10] sm:$0xff] %vm271_vm0, %v1061_v8  ;;  %v877_v10 = vpack.i.bf16 %v328_v5, %v327_v3  ;;  %v887_v11 = vld [vmem:[#allocation8 + $0x4] ss:$8 sps:$4 sm:$0xff]   ;;  %s1063_s9 = smov 96  }
  0x7f   : > { %275 = vst.msk [vmem:[#allocation2 + $0x18] sm:$0xff] %vm271_vm0, %v1061_v8  ;;  %v882_v9 = vpack.i.bf16 %v330_v7, %v329_v6  ;;  %873 = vrot.lane.b32.xlu0 %v872_v4, %s1062_s21  ;;  %v889_v12 = vld [vmem:[#allocation8] ss:$8 sps:$4 sm:$0xff]   ;;  %v890_v13 = vld [vmem:[#allocation8 + $0x14] ss:$8 sps:$4 sm:$0xff]   ;;  %460 = vmatprep.subr.bf16.mxu0 %v887_v11  ;;  %s1064_s20 = smov 64  }
  0x80   : > { %v748_v14 = vld [vmem:[%s1301_s13 + $0x10] sm:$0xff]  ;;  %461 = vmatpush1.bf16.msra.mxu0 %v889_v12  ;;  %v893_v16 = vld [vmem:[#allocation8 + $0x24] ss:$8 sps:$4 sm:$0xff]   ;;  %s1065_s25 = smov 16   ;;  %v749_v17 = vld [vmem:[%s1301_s13 + $0x18] sm:$0xff]  ;;  %vm278_vm1 = vcmask 130048  }
  0x81   : > { %883 = vrot.lane.b32.xlu1 %v882_v9, %s1063_s9  ;;  %v892_v15 = vld [vmem:[#allocation8 + $0x10] ss:$8 sps:$4 sm:$0xff]   ;;  %462 = vmatprep.subr.bf16.mxu0 %v890_v13  ;;  %v895_v18 = vld [vmem:[#allocation8 + $0x20] ss:$8 sps:$4 sm:$0xff]   ;;  %v896_v19 = vld [vmem:[#allocation8 + $0x34] ss:$8 sps:$4 sm:$0xff]  }
  0x82   : > { %v898_v20 = vld [vmem:[#allocation8 + $0x30] ss:$8 sps:$4 sm:$0xff]   ;;  %v276_v21 = vld [vmem:[%s1301_s13] sm:$0xff]  ;;  %v277_v22 = vld [vmem:[%s1301_s13 + $0x8] sm:$0xff]  ;;  %vm292_vm2 = vcmask 261248   ;;  %vm357_vm3 = vcmask 523264  }
  0x83   : > { %878 = vrot.lane.b32.xlu0 %v877_v10, %s1064_s20  ;;  %v899_v23 = vld [vmem:[#allocation8 + $0x44] ss:$8 sps:$4 sm:$0xff]   ;;  %279 = vst.msk [vmem:[#allocation2] sm:$0xff] %vm278_vm1, %v276_v21  ;;  %280 = vst.msk [vmem:[#allocation2 + $0x8] sm:$0xff] %vm278_vm1, %v277_v22  ;;  %v901_v24 = vld [vmem:[#allocation8 + $0x40] ss:$8 sps:$4 sm:$0xff]  }
  0x84   : > { %463 = vmatpush1.bf16.msra.mxu0 %v892_v15  ;;  %v902_v25 = vld [vmem:[#allocation8 + $0x54] ss:$8 sps:$4 sm:$0xff]   ;;  %v904_v26 = vld [vmem:[#allocation8 + $0x50] ss:$8 sps:$4 sm:$0xff]   ;;  %v905_v27 = vld [vmem:[#allocation8 + $0x64] ss:$8 sps:$4 sm:$0xff]  }
  0x85   : > { %286 = vrot.lane.b32.xlu1 %v748_v14, %s1065_s25  ;;  %464 = vmatprep.subr.bf16.mxu0 %v893_v16  ;;  %v907_v28 = vld [vmem:[#allocation8 + $0x60] ss:$8 sps:$4 sm:$0xff]   ;;  %v908_v29 = vld [vmem:[#allocation8 + $0x74] ss:$8 sps:$4 sm:$0xff]   ;;  %v910_v30 = vld [vmem:[#allocation8 + $0x70] ss:$8 sps:$4 sm:$0xff]  }
  0x86   : > { %v323_v39 = vld [vmem:[%s1291_s29] sm:$0xff]  ;;  %v324_v40 = vld [vmem:[%s1291_s29 + $0x8] sm:$0xff]  ;;  %vm360_vm4 = vcmask 785408   ;;  %s269_s6 = scalar_lea.vmem [#allocation9], %s745_s23  ;;  %s586_s10 = scalar_lea.sflag [#allocation5], %s1287_s2 }
  0x87   : > { %288 = vrot.lane.b32.xlu0 %v749_v17, %s1065_s25 }
  0x88   : > { %465 = vmatpush1.bf16.msra.mxu0 %v895_v18 }
  0x89   : > { %466 = vmatprep.subr.bf16.mxu0 %v896_v19 }
  0x8a   : > { %v296_v31 = vld [vmem:[#allocation2 + $0x8] sm:$0xff]  ;;  %v295_v32 = vld [vmem:[#allocation2] sm:$0xff] }
  0x8b   : > { %v302_v33 = vsel %vm271_vm0, %v296_v31, 0.0  ;;  %v299_v34 = vsel %vm271_vm0, %v295_v32, 0.0  ;;  %v507_v60 = vpack.c.bf16 %v296_v31, %v295_v32 }
  0x8c   : > { %467 = vmatpush1.bf16.msra.mxu0 %v898_v20 }
  0x8d   : > { %468 = vmatprep.subr.bf16.mxu0 %v899_v23  ;;  %785 = vmatprep.mubr.msk.bf16.mxu1 %vm271_vm0, %v507_v60 }
  0x90   : > { %469 = vmatpush1.bf16.msra.mxu0 %v901_v24 }
  0x91   : > { %470 = vmatprep.subr.bf16.mxu0 %v902_v25 }
  0x94   : > { %471 = vmatpush1.bf16.msra.mxu0 %v904_v26  ;;  %v768_v26 = vld [vmem:[%s1382_s3] ss:$0 sm:$0xff] }
  0x95   : > { %472 = vmatprep.subr.bf16.mxu0 %v905_v27 }
  0x98   : > { %473 = vmatpush1.bf16.msra.mxu0 %v907_v28 }
  0x99   : > { %474 = vmatprep.subr.bf16.mxu0 %v908_v29 }
  0x9c   : > { %475 = vmatpush1.bf16.msra.mxu0 %v910_v30 }
  0xa6   : > { %303 = vadd.xlane.f32.xlu0 %v302_v33 }
  0xa9   : > { %300 = vadd.xlane.f32.xlu1 %v299_v34 }
  0xf1   : > { %v874_v35 = vpop.permute.xlu0 %873 }
  0xf2   : > { %v876_v37 = vunpack.i.h.bf16 %v874_v35  ;;  %v875_v38 = vunpack.i.l.bf16 %v874_v35 }
  0xf3   : > { %v884_v36 = vpop.permute.xlu1 %883 }
  0xf4   : > { %v886_v42 = vunpack.i.h.bf16 %v884_v36  ;;  %v885_v43 = vunpack.i.l.bf16 %v884_v36  ;;  %v355_v47 = vsel %vm271_vm0, %v323_v39, %v875_v38  ;;  %v356_v48 = vsel %vm271_vm0, %v324_v40, %v876_v37 }
  0xf5   : > { %v879_v41 = vpop.permute.xlu0 %878 }
  0xf6   : > { %v881_v44 = vunpack.i.h.bf16 %v879_v41  ;;  %v880_v45 = vunpack.i.l.bf16 %v879_v41 }
  0xf7   : > { %v287_v46 = vpop.permute.xlu1 %286 }
  0xf8   : > { %293 = vst.msk [vmem:[#allocation2 + $0x10] sm:$0xff] %vm292_vm2, %v287_v46  ;;  %v358_v49 = vsel %vm357_vm3, %v355_v47, %v880_v45  ;;  %v359_v50 = vsel %vm357_vm3, %v356_v48, %v881_v44 }
  0xf9   : > { %v361_v51 = vsel %vm360_vm4, %v358_v49, %v885_v43  ;;  %v362_v52 = vsel %vm360_vm4, %v359_v50, %v886_v42  ;;  %v289_v53 = vpop.permute.xlu0 %288 }
  0xfa   : > { %v363_v54 = vpack.c.bf16 %v362_v52, %v361_v51  ;;  %294 = vst.msk [vmem:[#allocation2 + $0x18] sm:$0xff] %vm292_vm2, %v289_v53 }
  0xfc   : > { %493 = vmatmul.mubr.bf16.vlgmr.msra.gmra.mrb[0].mxu0 %v363_v54 }
  0xff   : > { %v297_v55 = vld [vmem:[#allocation2 + $0x10] sm:$0xff] }
 0x100   : > { %v305_v56 = vsel %vm271_vm0, %v297_v55, 0.0 }
 0x101   : > { %306 = vadd.xlane.f32.xlu0 %v305_v56  ;;  %v298_v57 = vld [vmem:[#allocation2 + $0x18] sm:$0xff] }
 0x102   : > { %v308_v58 = vsel %vm271_vm0, %v298_v57, 0.0  ;;  %v508_v59 = vpack.c.bf16 %v298_v57, %v297_v55 }
 0x103   : > { %309 = vadd.xlane.f32.xlu1 %v308_v58 }
 0x133   : > { %v304_v61 = vpop.xlane.xlu0 %303 }
 0x134   : > { %v312_v0 = vadd.f32 1.0, %v304_v61 }
 0x136   : > { %v301_v62 = vpop.xlane.xlu1 %300  ;;  %v316_v5 = vmax.f32 %v312_v0, 1.0 }
 0x137   : > { %v311_v2 = vadd.f32 1.0, %v301_v62 }
 0x138   : > { %911 = vrsqrt.f32 %v316_v5 }
 0x139   : > { %v315_v6 = vmax.f32 %v311_v2, 1.0 }
 0x13b   : > { %913 = vrsqrt.f32 %v315_v6 }
 0x142   : > { %v912_v9 = vpop.eup %911 }
 0x145   : > { %v914_v10 = vpop.eup %913 }
 0x18e   : > { %v307_v63 = vpop.xlane.xlu0 %306 }
 0x18f   : > { %v313_v3 = vadd.f32 1.0, %v307_v63 }
 0x190   : > { %v310_v1 = vpop.xlane.xlu1 %309 }
 0x191   : > { %v314_v4 = vadd.f32 1.0, %v310_v1  ;;  %v317_v7 = vmax.f32 %v313_v3, 1.0 }
 0x193   : > { %v318_v8 = vmax.f32 %v314_v4, 1.0  ;;  %915 = vrsqrt.f32 %v317_v7 }
 0x195   : > { %917 = vrsqrt.f32 %v318_v8 }
 0x19d   : > { %v916_v11 = vpop.eup %915 }
 0x19f   : > { %v918_v13 = vpop.eup %917 }
 0x1cf   : > { %v494_v12 = vpop.f32.mrb[0].mxu0 }
 0x1d0   : > { %v496_v14 = vpop.f32.mrb[1].mxu0  ;;  %v503_v16 = vmul.f32 %v914_v10, %v494_v12 }
 0x1d1   : > { %v498_v15 = vpop.f32.mrb[2].mxu0  ;;  %v505_v19 = vmul.f32 %v916_v11, %v496_v14 }
 0x1d2   : > { %v504_v17 = vmul.f32 %v912_v9, %v498_v15  ;;  %v500_v18 = vpop.f32.mrb[3].mxu0 }
 0x1d3   : > { %v506_v20 = vmul.f32 %v918_v13, %v500_v18 }
 0x1d4   : > { %v509_v21 = vpack.c.bf16 %v504_v17, %v503_v16 }
 0x1d5   : > { %v510_v22 = vpack.c.bf16 %v506_v20, %v505_v19 }
 0x1d6   : > { %781 = vmatprep.subr.bf16.mxu1 %v509_v21 }
 0x1d7   : > { %782 = vmatpush3.bf16.msra.mxu1 %v509_v21 }
 0x1d8   : > { %783 = vmatprep.subr.bf16.mxu1 %v510_v22 }
 0x1db   : > { %784 = vmatpush3.bf16.msra.mxu1 %v510_v22 }
 0x1de   : > { %786 = vmatmul.mubr.msk.bf16.vlgmr.msra.gmra.mrb[0].mxu1 %vm271_vm0, %v508_v59 }
 0x2b1   : > { %v787_v23 = vpop.f32.mrb[0].mxu1 }
 0x2b2   : > { %v560_v24 = vadd.f32 %v787_v23, %v505_v19  ;;  %v551_v25 = vpop.f32.mrb[1].mxu1 }
 0x2b3   : > { %v552_v27 = vadd.f32 %v551_v25, %v503_v16  ;;  %v788_v28 = vpop.f32.mrb[2].mxu1 }
 0x2b4   : > { %v568_v29 = vmul.f32 %v916_v11, %v560_v24  ;;  %v563_v30 = vadd.f32 %v788_v28, %v506_v20  ;;  %v554_v31 = vpop.f32.mrb[3].mxu1 }
 0x2b5   : > { %v566_v32 = vmul.f32 %v914_v10, %v552_v27  ;;  %v555_v33 = vadd.f32 %v554_v31, %v504_v17 }
 0x2b6   : > { %v579_v34 = vadd.f32 %v768_v26, %v568_v29  ;;  %v569_v35 = vmul.f32 %v918_v13, %v563_v30 }
 0x2b7   : > { %v577_v36 = vadd.f32 %v768_v26, %v566_v32  ;;  %v567_v37 = vmul.f32 %v912_v9, %v555_v33 }
 0x2b8   : > { %583 = vst [vmem:[%s269_s6 + $0x10] sm:$0xff] %v579_v34  ;;  %v580_v38 = vadd.f32 %v768_v26, %v569_v35 }
 0x2b9   : > { %581 = vst [vmem:[%s269_s6] sm:$0xff] %v577_v36  ;;  %v578_v39 = vadd.f32 %v768_v26, %v567_v37 }
 0x2ba   : > { %584 = vst [vmem:[%s269_s6 + $0x18] sm:$0xff] %v580_v38 }
 0x2bb   : > { %582 = vst [vmem:[%s269_s6 + $0x8] sm:$0xff] %v578_v39 }
 0x2bc   : > { %s776_s14 = sshll.u32 %s1119_s19, 8  ;;  %s615_s7 = sshll.u32 %s269_s6, 4  ;;  %s616_s7 = int_to_ptr.vmem [resolvable:$true] %s615_s7 }
 0x2bd   : > { %s598_s26 = scalar_lea.hbm %s1383_s4, %s776_s14  ;;  %s1066_s29 = smov 256  }
 0x2be   : > { %797 = sst [smem:[#allocation11]] (%p1192_p12), %s1066_s29  ;;  %s1067_s0 = smov 512  }
 0x2bf   : > { %798 = sst [smem:[#allocation11 + $0x1]] (%p1192_p12), %s1067_s0  ;;  %s1068_s2 = smov 2  }
 0x2c0   : > { %799 = sst [smem:[#allocation11 + $0x2]] (%p1192_p12), %s1068_s2  ;;  %s1069_s23 = smov 128  }
 0x2c1   : > { %800 = sst [smem:[#allocation11 + $0x3]] (%p1192_p12), %s1069_s23  ;;  %s1070_s19 = smov 8  }
 0x2c2   : > { %801 = sst [smem:[#allocation11 + $0x4]] (%p1192_p12), %s1069_s23  ;;  %s1071_s12 = smov [#allocation10]  }
 0x2c3   : > { %802 = sst [smem:[#allocation11 + $0x5]] (%p1192_p12), %s1070_s19  ;;  %s1072_s13 = smov 0  }
 0x2c4   : > { %803 = dma.general (%p1192_p12), %s616_s7, 512, %s598_s26, %s586_s10, %s1071_s12, [#allocation11], %s1072_s13, 0  }
 0x2c5 PF: > { %s643_s21 = sand.u32 1, %s1041_s15   ;;  %p1402_p3 = scmp.ne.s32.totalorder %s1390_s22, 0 }
 0x2c6   : > { %p1403_p7 = scmp.ge.s32.totalorder %s1053_s18, 2  ;;  %s644_s9 = scalar_lea.sflag [#allocation5], %s643_s21 }
 0x2c8   : > { %p817_p9 = pnand %p1403_p7, %p1402_p3 }
 0x2ca   : > { %1036 = dma.done.wait (!%p817_p9), %s644_s9, 512  }
 0x2cb   : > { %1038 = vsyncadd (!%p817_p9), %s644_s9, 4294966784  ;;  %p20_p1 = scmp.ge.s32.totalorder %s1154_s27, 4   ;;  %s1404_s15 = smov %s1045_s16 }
 0x2cc   : > { %s1405_s16 = smov %s1049_s17  ;;  %s1406_s17 = smov %s1188_s24 }
 0x2cd   : > { %s1407_s18 = smov %s1154_s27  ;;  %22 = sbr.rel (!%p20_p1) target bundleno = 10 (0xa), region = 104 }
 0x2d4   :  { %649 = vsyncpa [#allocation4], 1 }
 0x2d5   :  { %651 = vsyncpa [#allocation4 + $0x1], 1 }
 0x2d6   :  { %652 = vsyncpa [#allocation7], 1 }
 0x2d7   :  { %654 = vsyncpa [#allocation7 + $0x1], 1 }
 0x2d8   :  { %655 = vsyncpa [#allocation5], 1 }
 0x2d9   :  { %657 = vsyncpa [#allocation5 + $0x1], 1 }

</bundles_post_ra>
